<compile_context>
chip_gen: v6e
topology: v6e:2x2x1
jax: 0.10.0
libtpu: 0.0.40
codegen_flags: <defaults>
</compile_context>

<pallas_src>
import functools

import jax
import jax.numpy as jnp
from jax.experimental import pallas as pl
from jax.experimental.pallas import tpu as pltpu

LANE = 128


def _round_up(x, m):
    return (x + m - 1) // m * m


def _pick_tm(m8):
    """Generation-aware M-tile: bigger tiles on 128 MiB VMEM parts (v5e/v6e),
    smaller on v7x (64 MiB).  Footprint stays far below the 32 MiB scoped limit."""
    try:
        vmem_bytes = pltpu.get_tpu_info().vmem_capacity_bytes
    except Exception:
        vmem_bytes = 64 * 1024 * 1024
    tm = 2048 if vmem_bytes >= 100 * 1024 * 1024 else 1024
    return min(tm, m8)


def conv_mm_bias_relu_kernel(cols_ref, w_ref, shift_ref, out_ref, *, apply_relu):
    """One M-tile: (TM, K)bf16 @ (K, Cp)bf16 -> f32, + shift, optional ReLU."""
    acc = jnp.dot(cols_ref[...], w_ref[...], preferred_element_type=jnp.float32)
    y = acc + shift_ref[...]
    if apply_relu:
        y = jnp.maximum(y, 0.0)
    out_ref[...] = y


def _im2col_3d(x, ksize, stride, pad):
    """x: (N, D, H, W, C) channels-last -> cols (N*Do*Ho*Wo, ksize^3*C)."""
    N, D, H, W, C = x.shape
    xp = jnp.pad(x, ((0, 0), (pad, pad), (pad, pad), (pad, pad), (0, 0)))
    Do = (D + 2 * pad - ksize) // stride + 1
    Ho = (H + 2 * pad - ksize) // stride + 1
    Wo = (W + 2 * pad - ksize) // stride + 1
    taps = []
    for kd in range(ksize):
        for kh in range(ksize):
            for kw in range(ksize):
                taps.append(
                    xp[:, kd:kd + stride * Do:stride,
                       kh:kh + stride * Ho:stride,
                       kw:kw + stride * Wo:stride, :]
                )
    cols = jnp.stack(taps, axis=-2)                      # (N, Do, Ho, Wo, 27, C)
    cols = cols.reshape(N * Do * Ho * Wo, ksize ** 3 * C)
    return cols, (N, Do, Ho, Wo)


def conv3d_pallas(x, w_oidhw, scale, shift, *, stride, apply_relu):
    """x: (N, D, H, W, Cin), w_oidhw: (Cout, Cin, 3, 3, 3) -> (N, Do, Ho, Wo, Cout)."""
    Cout, Cin, kD, kH, kW = w_oidhw.shape
    cols, (N, Do, Ho, Wo) = _im2col_3d(x, kD, stride, pad=1)
    M, K = cols.shape

    # Fold BN/bias scale into the weights; (Cout,Cin,kD,kH,kW) -> (27*Cin, Cout).
    w_mat = jnp.transpose(w_oidhw, (2, 3, 4, 1, 0)).reshape(K, Cout)
    w_mat = w_mat * scale[None, :]

    # Lane-dense output: pad Cout up to a multiple of 128 (zeros, sliced off).
    Cp = _round_up(Cout, LANE)
    w_mat = jnp.pad(w_mat, ((0, 0), (0, Cp - Cout))).astype(jnp.bfloat16)
    shift_p = jnp.pad(shift.reshape(1, Cout).astype(jnp.float32),
                      ((0, 0), (0, Cp - Cout)))

    # Tile M (row) axis; pad M to a tile multiple so every block is full.
    tm = _pick_tm(_round_up(M, 8))
    Mp = _round_up(M, tm)
    cols = jnp.pad(cols, ((0, Mp - M), (0, 0))).astype(jnp.bfloat16)

    cost = pl.CostEstimate(
        flops=2 * Mp * K * Cp,
        transcendentals=0,
        bytes_accessed=Mp * K * 2 + K * Cp * 2 + Cp * 4 + Mp * Cp * 4,
    )

    out = pl.pallas_call(
        functools.partial(conv_mm_bias_relu_kernel, apply_relu=apply_relu),
        out_shape=jax.ShapeDtypeStruct((Mp, Cp), jnp.float32),
        grid=(Mp // tm,),
        in_specs=[
            pl.BlockSpec((tm, K), lambda i: (i, 0)),   # cols tile (pipelined)
            pl.BlockSpec((K, Cp), lambda i: (0, 0)),   # weights: resident, no re-DMA
            pl.BlockSpec((1, Cp), lambda i: (0, 0)),   # shift:   resident
        ],
        out_specs=pl.BlockSpec((tm, Cp), lambda i: (i, 0)),
        compiler_params=pltpu.CompilerParams(
            dimension_semantics=("parallel",),
            vmem_limit_bytes=32 * 1024 * 1024,
        ),
        cost_estimate=cost,
    )(cols, w_mat, shift_p)

    return out[:M, :Cout].reshape(N, Do, Ho, Wo, Cout)


def bn_fold(conv_bias, gamma, beta, mean, var, eps=1e-5):
    """Fold conv bias + inference-mode BatchNorm into per-channel scale/shift."""
    s = gamma / jnp.sqrt(var + eps)
    t = (conv_bias - mean) * s + beta
    return s, t


def down_forward(x_ncdhw, p):
    # TODO(synk): BatchNorm3d is applied in inference mode with explicit running
    # stats (training-mode batch-statistic updates are not replicated).
    x = jnp.transpose(x_ncdhw, (0, 2, 3, 4, 1))  # NCDHW -> NDHWC (once)
    # mpconv[0]: Conv3d(in_ch, out_ch, k=3, stride=2, pad=1) + bias, no BN/ReLU.
    x = conv3d_pallas(x, p["w_s"], scale=jnp.ones_like(p["b_s"]), shift=p["b_s"],
                      stride=2, apply_relu=False)
    # double_conv: (Conv3d k=3 pad=1 -> BN -> ReLU) x 2, BN folded to scale/shift.
    s, t = bn_fold(p["b_a"], p["g_a"], p["be_a"], p["m_a"], p["v_a"])
    x = conv3d_pallas(x, p["w_a"], scale=s, shift=t, stride=1, apply_relu=True)
    s, t = bn_fold(p["b_b"], p["g_b"], p["be_b"], p["m_b"], p["v_b"])
    x = conv3d_pallas(x, p["w_b"], scale=s, shift=t, stride=1, apply_relu=True)
    return jnp.transpose(x, (0, 4, 1, 2, 3))     # NDHWC -> NCDHW


# ---------------------- pure-JAX reference (sanity check) ----------------------
def _conv3d_ref(x_ncdhw, w, b, stride):
    out = jax.lax.conv_general_dilated(
        x_ncdhw, w, window_strides=(stride,) * 3, padding=[(1, 1)] * 3,
        dimension_numbers=("NCDHW", "OIDHW", "NCDHW"),
        precision=jax.lax.Precision.HIGHEST)
    return out + b.reshape(1, -1, 1, 1, 1)


def _ref_forward(x, p, eps=1e-5):
    def bn(y, g, be, m, v):
        r = lambda a: a.reshape(1, -1, 1, 1, 1)
        return r(g) * (y - r(m)) / jnp.sqrt(r(v) + eps) + r(be)
    y = _conv3d_ref(x, p["w_s"], p["b_s"], 2)
    y = jnp.maximum(bn(_conv3d_ref(y, p["w_a"], p["b_a"], 1),
                       p["g_a"], p["be_a"], p["m_a"], p["v_a"]), 0.0)
    y = jnp.maximum(bn(_conv3d_ref(y, p["w_b"], p["b_b"], 1),
                       p["g_b"], p["be_b"], p["m_b"], p["v_b"]), 0.0)
    return y


if __name__ == "__main__":
    key = jax.random.PRNGKey(0)
    N, in_ch, out_ch, D, H, W = 2, 4, 8, 8, 8, 8
    ks = jax.random.split(key, 16)

    x = jax.random.normal(ks[0], (N, in_ch, D, H, W), jnp.float32)

    params = dict(
        # down: Conv3d(in_ch, out_ch, 3, stride=2, padding=1)
        w_s=0.1 * jax.random.normal(ks[1], (out_ch, in_ch, 3, 3, 3), jnp.float32),
        b_s=0.1 * jax.random.normal(ks[2], (out_ch,), jnp.float32),
        # double_conv conv1 + BN1
        w_a=0.1 * jax.random.normal(ks[3], (out_ch, out_ch, 3, 3, 3), jnp.float32),
        b_a=0.1 * jax.random.normal(ks[4], (out_ch,), jnp.float32),
        g_a=1.0 + 0.1 * jax.random.normal(ks[5], (out_ch,), jnp.float32),
        be_a=0.1 * jax.random.normal(ks[6], (out_ch,), jnp.float32),
        m_a=0.1 * jax.random.normal(ks[7], (out_ch,), jnp.float32),
        v_a=jax.random.uniform(ks[8], (out_ch,), jnp.float32, 0.5, 1.5),
        # double_conv conv2 + BN2
        w_b=0.1 * jax.random.normal(ks[9], (out_ch, out_ch, 3, 3, 3), jnp.float32),
        b_b=0.1 * jax.random.normal(ks[10], (out_ch,), jnp.float32),
        g_b=1.0 + 0.1 * jax.random.normal(ks[11], (out_ch,), jnp.float32),
        be_b=0.1 * jax.random.normal(ks[12], (out_ch,), jnp.float32),
        m_b=0.1 * jax.random.normal(ks[13], (out_ch,), jnp.float32),
        v_b=jax.random.uniform(ks[14], (out_ch,), jnp.float32, 0.5, 1.5),
    )

    out = jax.jit(down_forward)(x, params)
    out = jax.block_until_ready(out)
    assert out.shape == (N, out_ch, D // 2, H // 2, W // 2), out.shape

    ref = _ref_forward(x, params)
    # Tolerance relaxed vs the f32/HIGHEST reference because the kernel feeds
    # bf16 operands to the MXU (f32 accumulation), per the perf review.
    max_err = float(jnp.max(jnp.abs(out - ref)))
    assert jnp.allclose(out, ref, atol=5e-2, rtol=5e-2), max_err

    print("KERNEL_OK")
</pallas_src>

<mosaic_0001>
module attributes {stable_mosaic.version = 11 : i64} {
  func.func @conv_mm_bias_relu_kernel(%arg0: i32, %arg1: memref<128x108xbf16, #tpu.memory_space<vmem>>, %arg2: memref<108x128xbf16, #tpu.memory_space<vmem>>, %arg3: memref<1x128xf32, #tpu.memory_space<vmem>>, %arg4: memref<128x128xf32, #tpu.memory_space<vmem>>) attributes {dimension_semantics = [#tpu.dimension_semantics<parallel>], iteration_bounds = array<i64: 1>, scalar_prefetch = 0 : i64, scratch_operands = 0 : i64, tpu.core_type = #tpu.core_type<tc>, window_params = [{transform_indices = @transform_0, window_bounds = array<i64: 128, 108>}, {pipeline_mode = #tpu.pipeline_mode<synchronous>, transform_indices = @transform_1, window_bounds = array<i64: 108, 128>}, {pipeline_mode = #tpu.pipeline_mode<synchronous>, transform_indices = @transform_2, window_bounds = array<i64: 1, 128>}, {transform_indices = @transform_3, window_bounds = array<i64: 128, 128>}]} {
    %c0 = arith.constant 0 : index
    %c0_0 = arith.constant 0 : index
    %0 = vector.load %arg1[%c0, %c0_0] : memref<128x108xbf16, #tpu.memory_space<vmem>>, vector<128x108xbf16>
    %c0_1 = arith.constant 0 : index
    %c0_2 = arith.constant 0 : index
    %1 = vector.load %arg2[%c0_1, %c0_2] : memref<108x128xbf16, #tpu.memory_space<vmem>>, vector<108x128xbf16>
    %cst = arith.constant dense<0.000000e+00> : vector<128x128xf32>
    %2 = tpu.matmul %0, %1, %cst {dimension_numbers = #tpu.dot_dimension_numbers<[1], [0], [0], [1], [0, 0, 1, 1], [], []>} : vector<128x108xbf16>, vector<108x128xbf16>, vector<128x128xf32> -> vector<128x128xf32>
    %c0_3 = arith.constant 0 : index
    %c0_4 = arith.constant 0 : index
    %3 = vector.load %arg3[%c0_3, %c0_4] : memref<1x128xf32, #tpu.memory_space<vmem>>, vector<1x128xf32>
    %4 = vector.broadcast %3 : vector<1x128xf32> to vector<128x128xf32>
    %5 = arith.addf %2, %4 : vector<128x128xf32>
    %c0_5 = arith.constant 0 : index
    %c0_6 = arith.constant 0 : index
    %6 = vector.load %arg4[%c0_5, %c0_6] : memref<128x128xf32, #tpu.memory_space<vmem>>, vector<128x128xf32>
    tpu.vector_store %arg4[%c0_5, %c0_6], %5 {strides = array<i32>} : memref<128x128xf32, #tpu.memory_space<vmem>>, vector<128x128xf32>,
    return
  }
  func.func @transform_0(%arg0: i32) -> (i32, i32) {
    %c0_i32 = arith.constant 0 : i32
    %c0_i32_0 = arith.constant 0 : i32
    return %arg0, %c0_i32 : i32, i32
  }
  func.func @transform_1(%arg0: i32) -> (i32, i32) {
    %c0_i32 = arith.constant 0 : i32
    %c0_i32_0 = arith.constant 0 : i32
    %c0_i32_1 = arith.constant 0 : i32
    return %c0_i32, %c0_i32_0 : i32, i32
  }
  func.func @transform_2(%arg0: i32) -> (i32, i32) {
    %c0_i32 = arith.constant 0 : i32
    %c0_i32_0 = arith.constant 0 : i32
    %c0_i32_1 = arith.constant 0 : i32
    return %c0_i32, %c0_i32_0 : i32, i32
  }
  func.func @transform_3(%arg0: i32) -> (i32, i32) {
    %c0_i32 = arith.constant 0 : i32
    %c0_i32_0 = arith.constant 0 : i32
    return %arg0, %c0_i32 : i32, i32
  }
}

module attributes {stable_mosaic.version = 11 : i64} {
  func.func @conv_mm_bias_relu_kernel(%arg0: i32, %arg1: memref<128x216xbf16, #tpu.memory_space<vmem>>, %arg2: memref<216x128xbf16, #tpu.memory_space<vmem>>, %arg3: memref<1x128xf32, #tpu.memory_space<vmem>>, %arg4: memref<128x128xf32, #tpu.memory_space<vmem>>) attributes {dimension_semantics = [#tpu.dimension_semantics<parallel>], iteration_bounds = array<i64: 1>, scalar_prefetch = 0 : i64, scratch_operands = 0 : i64, tpu.core_type = #tpu.core_type<tc>, window_params = [{transform_indices = @transform_0, window_bounds = array<i64: 128, 216>}, {pipeline_mode = #tpu.pipeline_mode<synchronous>, transform_indices = @transform_1, window_bounds = array<i64: 216, 128>}, {pipeline_mode = #tpu.pipeline_mode<synchronous>, transform_indices = @transform_2, window_bounds = array<i64: 1, 128>}, {transform_indices = @transform_3, window_bounds = array<i64: 128, 128>}]} {
    %c0 = arith.constant 0 : index
    %c0_0 = arith.constant 0 : index
    %0 = vector.load %arg1[%c0, %c0_0] : memref<128x216xbf16, #tpu.memory_space<vmem>>, vector<128x216xbf16>
    %c0_1 = arith.constant 0 : index
    %c0_2 = arith.constant 0 : index
    %1 = vector.load %arg2[%c0_1, %c0_2] : memref<216x128xbf16, #tpu.memory_space<vmem>>, vector<216x128xbf16>
    %cst = arith.constant dense<0.000000e+00> : vector<128x128xf32>
    %2 = tpu.matmul %0, %1, %cst {dimension_numbers = #tpu.dot_dimension_numbers<[1], [0], [0], [1], [0, 0, 1, 1], [], []>} : vector<128x216xbf16>, vector<216x128xbf16>, vector<128x128xf32> -> vector<128x128xf32>
    %c0_3 = arith.constant 0 : index
    %c0_4 = arith.constant 0 : index
    %3 = vector.load %arg3[%c0_3, %c0_4] : memref<1x128xf32, #tpu.memory_space<vmem>>, vector<1x128xf32>
    %4 = vector.broadcast %3 : vector<1x128xf32> to vector<128x128xf32>
    %5 = arith.addf %2, %4 : vector<128x128xf32>
    %cst_5 = arith.constant 0.000000e+00 : f32
    %6 = vector.broadcast %cst_5 : f32 to vector<128x128xf32>
    %7 = arith.maximumf %5, %6 : vector<128x128xf32>
    %c0_6 = arith.constant 0 : index
    %c0_7 = arith.constant 0 : index
    %8 = vector.load %arg4[%c0_6, %c0_7] : memref<128x128xf32, #tpu.memory_space<vmem>>, vector<128x128xf32>
    tpu.vector_store %arg4[%c0_6, %c0_7], %7 {strides = array<i32>} : memref<128x128xf32, #tpu.memory_space<vmem>>, vector<128x128xf32>,
    return
  }
  func.func @transform_0(%arg0: i32) -> (i32, i32) {
    %c0_i32 = arith.constant 0 : i32
    %c0_i32_0 = arith.constant 0 : i32
    return %arg0, %c0_i32 : i32, i32
  }
  func.func @transform_1(%arg0: i32) -> (i32, i32) {
    %c0_i32 = arith.constant 0 : i32
    %c0_i32_0 = arith.constant 0 : i32
    %c0_i32_1 = arith.constant 0 : i32
    return %c0_i32, %c0_i32_0 : i32, i32
  }
  func.func @transform_2(%arg0: i32) -> (i32, i32) {
    %c0_i32 = arith.constant 0 : i32
    %c0_i32_0 = arith.constant 0 : i32
    %c0_i32_1 = arith.constant 0 : i32
    return %c0_i32, %c0_i32_0 : i32, i32
  }
  func.func @transform_3(%arg0: i32) -> (i32, i32) {
    %c0_i32 = arith.constant 0 : i32
    %c0_i32_0 = arith.constant 0 : i32
    return %arg0, %c0_i32 : i32, i32
  }
}

module attributes {stable_mosaic.version = 11 : i64} {
  func.func @conv_mm_bias_relu_kernel(%arg0: i32, %arg1: memref<128x216xbf16, #tpu.memory_space<vmem>>, %arg2: memref<216x128xbf16, #tpu.memory_space<vmem>>, %arg3: memref<1x128xf32, #tpu.memory_space<vmem>>, %arg4: memref<128x128xf32, #tpu.memory_space<vmem>>) attributes {dimension_semantics = [#tpu.dimension_semantics<parallel>], iteration_bounds = array<i64: 1>, scalar_prefetch = 0 : i64, scratch_operands = 0 : i64, tpu.core_type = #tpu.core_type<tc>, window_params = [{transform_indices = @transform_0, window_bounds = array<i64: 128, 216>}, {pipeline_mode = #tpu.pipeline_mode<synchronous>, transform_indices = @transform_1, window_bounds = array<i64: 216, 128>}, {pipeline_mode = #tpu.pipeline_mode<synchronous>, transform_indices = @transform_2, window_bounds = array<i64: 1, 128>}, {transform_indices = @transform_3, window_bounds = array<i64: 128, 128>}]} {
    %c0 = arith.constant 0 : index
    %c0_0 = arith.constant 0 : index
    %0 = vector.load %arg1[%c0, %c0_0] : memref<128x216xbf16, #tpu.memory_space<vmem>>, vector<128x216xbf16>
    %c0_1 = arith.constant 0 : index
    %c0_2 = arith.constant 0 : index
    %1 = vector.load %arg2[%c0_1, %c0_2] : memref<216x128xbf16, #tpu.memory_space<vmem>>, vector<216x128xbf16>
    %cst = arith.constant dense<0.000000e+00> : vector<128x128xf32>
    %2 = tpu.matmul %0, %1, %cst {dimension_numbers = #tpu.dot_dimension_numbers<[1], [0], [0], [1], [0, 0, 1, 1], [], []>} : vector<128x216xbf16>, vector<216x128xbf16>, vector<128x128xf32> -> vector<128x128xf32>
    %c0_3 = arith.constant 0 : index
    %c0_4 = arith.constant 0 : index
    %3 = vector.load %arg3[%c0_3, %c0_4] : memref<1x128xf32, #tpu.memory_space<vmem>>, vector<1x128xf32>
    %4 = vector.broadcast %3 : vector<1x128xf32> to vector<128x128xf32>
    %5 = arith.addf %2, %4 : vector<128x128xf32>
    %cst_5 = arith.constant 0.000000e+00 : f32
    %6 = vector.broadcast %cst_5 : f32 to vector<128x128xf32>
    %7 = arith.maximumf %5, %6 : vector<128x128xf32>
    %c0_6 = arith.constant 0 : index
    %c0_7 = arith.constant 0 : index
    %8 = vector.load %arg4[%c0_6, %c0_7] : memref<128x128xf32, #tpu.memory_space<vmem>>, vector<128x128xf32>
    tpu.vector_store %arg4[%c0_6, %c0_7], %7 {strides = array<i32>} : memref<128x128xf32, #tpu.memory_space<vmem>>, vector<128x128xf32>,
    return
  }
  func.func @transform_0(%arg0: i32) -> (i32, i32) {
    %c0_i32 = arith.constant 0 : i32
    %c0_i32_0 = arith.constant 0 : i32
    return %arg0, %c0_i32 : i32, i32
  }
  func.func @transform_1(%arg0: i32) -> (i32, i32) {
    %c0_i32 = arith.constant 0 : i32
    %c0_i32_0 = arith.constant 0 : i32
    %c0_i32_1 = arith.constant 0 : i32
    return %c0_i32, %c0_i32_0 : i32, i32
  }
  func.func @transform_2(%arg0: i32) -> (i32, i32) {
    %c0_i32 = arith.constant 0 : i32
    %c0_i32_0 = arith.constant 0 : i32
    %c0_i32_1 = arith.constant 0 : i32
    return %c0_i32, %c0_i32_0 : i32, i32
  }
  func.func @transform_3(%arg0: i32) -> (i32, i32) {
    %c0_i32 = arith.constant 0 : i32
    %c0_i32_0 = arith.constant 0 : i32
    return %arg0, %c0_i32 : i32, i32
  }
}

</mosaic_0001>

<bundles_post_ra>
// kernel: down_forward.3
= control target key start
LH: loop header
LB: loop body
LE: loop exit
PB: predicated region body
PF: predicated region fallthrough
CT: control target
= control target key end

     0   :  { %vm158_vm0 = vcmask 1045504   ;;  %vm133_vm1 = vcmask 883712   ;;  %s503_s1 = inlined_call_operand.vmem [shape: bf16[108,128], index: 1, kind: input, shape index: {}]   ;;  %s504_s0 = inlined_call_operand.vmem [shape: bf16[128,108], index: 0, kind: input, shape index: {}]   ;;  %s505_s2 = inlined_call_operand.vmem [shape: f32[1,128], index: 2, kind: input, shape index: {}]   ;;  %s506_s3 = inlined_call_operand.vmem [shape: f32[128,128], index: 3, kind: output, shape index: {}]  }
   0x1   :  { %v364_v0 = vld [vmem:[%s503_s1 + $0x30] sm:$0x3f]   ;;  %v365_v1 = vld [vmem:[%s503_s1 + $0x28] sm:$0xff]   ;;  %v366_v3 = vld [vmem:[%s503_s1 + $0x20] sm:$0xff]  }
   0x2   :  { %362 = vmatprep.subr.msk.bf16.mxu0 %vm158_vm0, %v364_v0  ;;  %363 = vmatprep.subr.msk.bf16.mxu1 %vm158_vm0, %v364_v0  ;;  %v160_v2 = vsel %vm158_vm0, %v364_v0, 0  ;;  %v367_v4 = vld [vmem:[%s503_s1 + $0x18] sm:$0xff]   ;;  %v371_v5 = vld [vmem:[%s504_s0] sm:$0xff]   ;;  %v368_v7 = vld [vmem:[%s503_s1 + $0x10] sm:$0xff]  }
   0x3   :  { %319 = vmatpush3.bf16.msra.mxu0 %v160_v2  ;;  %355 = vmatpush3.bf16.msra.mxu1 %v160_v2  ;;  %v372_v6 = vld [vmem:[%s504_s0 + $0x20] sm:$0xff]   ;;  %v369_v8 = vld [vmem:[%s503_s1 + $0x8] sm:$0xff]   ;;  %v375_v12 = vld [vmem:[%s504_s0 + $0x10] sm:$0xff]  }
   0x4   :  { %320 = vmatprep.subr.bf16.mxu0 %v365_v1  ;;  %349 = vmatprep.subr.bf16.mxu1 %v365_v1  ;;  %v370_v9 = vld [vmem:[%s503_s1] sm:$0xff]   ;;  %v373_v10 = vld [vmem:[%s504_s0 + $0x8] sm:$0xff]   ;;  %v376_v13 = vld [vmem:[%s504_s0 + $0x30] sm:$0xff]  }
   0x5   :  { %332 = vmatprep.mubr.msk.bf16.mxu0 %vm133_vm1, %v371_v5  ;;  %340 = vmatprep.mubr.msk.bf16.mxu1 %vm133_vm1, %v372_v6  ;;  %v374_v11 = vld [vmem:[%s504_s0 + $0x28] sm:$0xff]   ;;  %v377_v14 = vld [vmem:[%s504_s0 + $0x18] sm:$0xff]   ;;  %v279_v16 = vld [vmem:[%s505_s2] ss:$0 sm:$0xff] }
   0x6   :  { %v378_v15 = vld [vmem:[%s504_s0 + $0x38] sm:$0xff]  }
   0x7   :  { %321 = vmatpush3.bf16.msra.mxu0 %v365_v1  ;;  %356 = vmatpush3.bf16.msra.mxu1 %v365_v1 }
   0x8   :  { %322 = vmatprep.subr.bf16.mxu0 %v366_v3  ;;  %350 = vmatprep.subr.bf16.mxu1 %v366_v3 }
   0xb   :  { %323 = vmatpush3.bf16.msra.mxu0 %v366_v3  ;;  %357 = vmatpush3.bf16.msra.mxu1 %v366_v3 }
   0xc   :  { %324 = vmatprep.subr.bf16.mxu0 %v367_v4  ;;  %351 = vmatprep.subr.bf16.mxu1 %v367_v4 }
   0xf   :  { %325 = vmatpush3.bf16.msra.mxu0 %v367_v4  ;;  %358 = vmatpush3.bf16.msra.mxu1 %v367_v4 }
  0x10   :  { %326 = vmatprep.subr.bf16.mxu0 %v368_v7  ;;  %352 = vmatprep.subr.bf16.mxu1 %v368_v7 }
  0x13   :  { %327 = vmatpush3.bf16.msra.mxu0 %v368_v7  ;;  %359 = vmatpush3.bf16.msra.mxu1 %v368_v7 }
  0x14   :  { %328 = vmatprep.subr.bf16.mxu0 %v369_v8  ;;  %353 = vmatprep.subr.bf16.mxu1 %v369_v8 }
  0x17   :  { %329 = vmatpush3.bf16.msra.mxu0 %v369_v8  ;;  %360 = vmatpush3.bf16.msra.mxu1 %v369_v8 }
  0x18   :  { %330 = vmatprep.subr.bf16.mxu0 %v370_v9  ;;  %354 = vmatprep.subr.bf16.mxu1 %v370_v9 }
  0x1b   :  { %331 = vmatpush3.bf16.msra.mxu0 %v370_v9  ;;  %361 = vmatpush3.bf16.msra.mxu1 %v370_v9 }
  0x1e   :  { %333 = vmatmul.mubr.msk.bf16.vlgmr.msra.gmra.mxu0 %vm133_vm1, %v373_v10  ;;  %341 = vmatmul.mubr.msk.bf16.vlgmr.msra.gmra.mxu1 %vm133_vm1, %v374_v11 }
  0x1f   :  { %336 = vmatprep.mubr.msk.bf16.mxu0 %vm133_vm1, %v375_v12  ;;  %344 = vmatprep.mubr.msk.bf16.mxu1 %vm133_vm1, %v376_v13 }
  0x26   :  { %337 = vmatmul.mubr.msk.bf16.gmra.mxu0 %vm133_vm1, %v377_v14  ;;  %345 = vmatmul.mubr.msk.bf16.gmra.mxu1 %vm133_vm1, %v378_v15 }
  0xde   :  { %v334_v17 = vpop.f32.mrf.mxu0  ;;  %v342_v18 = vpop.f32.mrf.mxu1 }
  0xdf   :  { %v205_v19 = vadd.f32 %v334_v17, %v279_v16  ;;  %v237_v20 = vadd.f32 %v342_v18, %v279_v16 }
  0xe0   :  { %v196_v21 = vpop.f32.mrf.mxu0  ;;  %v228_v22 = vpop.f32.mrf.mxu1 }
  0xe1   :  { %261 = vst [vmem:[%s506_s3 + $0x10] sm:$0xff] %v205_v19  ;;  %269 = vst [vmem:[%s506_s3 + $0x50] sm:$0xff] %v237_v20  ;;  %v197_v23 = vadd.f32 %v279_v16, %v196_v21  ;;  %v229_v24 = vadd.f32 %v279_v16, %v228_v22 }
  0xe2   :  { %v335_v25 = vpop.f32.mrf.mxu0  ;;  %v343_v26 = vpop.f32.mrf.mxu1 }
  0xe3   :  { %259 = vst [vmem:[%s506_s3] sm:$0xff] %v197_v23  ;;  %267 = vst [vmem:[%s506_s3 + $0x40] sm:$0xff] %v229_v24  ;;  %v208_v27 = vadd.f32 %v335_v25, %v279_v16  ;;  %v240_v28 = vadd.f32 %v343_v26, %v279_v16 }
  0xe4   :  { %v199_v29 = vpop.f32.mrf.mxu0  ;;  %v231_v30 = vpop.f32.mrf.mxu1 }
  0xe5   :  { %262 = vst [vmem:[%s506_s3 + $0x18] sm:$0xff] %v208_v27  ;;  %270 = vst [vmem:[%s506_s3 + $0x58] sm:$0xff] %v240_v28  ;;  %v200_v31 = vadd.f32 %v279_v16, %v199_v29  ;;  %v232_v32 = vadd.f32 %v279_v16, %v231_v30 }
  0xe6   :  { %v338_v33 = vpop.f32.mrf.mxu0  ;;  %v346_v34 = vpop.f32.mrf.mxu1 }
  0xe7   :  { %260 = vst [vmem:[%s506_s3 + $0x8] sm:$0xff] %v200_v31  ;;  %268 = vst [vmem:[%s506_s3 + $0x48] sm:$0xff] %v232_v32  ;;  %v221_v35 = vadd.f32 %v338_v33, %v279_v16  ;;  %v253_v36 = vadd.f32 %v346_v34, %v279_v16 }
  0xe8   :  { %v212_v37 = vpop.f32.mrf.mxu0  ;;  %v244_v38 = vpop.f32.mrf.mxu1 }
  0xe9   :  { %265 = vst [vmem:[%s506_s3 + $0x30] sm:$0xff] %v221_v35  ;;  %273 = vst [vmem:[%s506_s3 + $0x70] sm:$0xff] %v253_v36  ;;  %v213_v39 = vadd.f32 %v279_v16, %v212_v37  ;;  %v245_v40 = vadd.f32 %v279_v16, %v244_v38 }
  0xea   :  { %v339_v41 = vpop.f32.mrf.mxu0  ;;  %v347_v42 = vpop.f32.mrf.mxu1 }
  0xeb   :  { %263 = vst [vmem:[%s506_s3 + $0x20] sm:$0xff] %v213_v39  ;;  %271 = vst [vmem:[%s506_s3 + $0x60] sm:$0xff] %v245_v40  ;;  %v224_v43 = vadd.f32 %v339_v41, %v279_v16  ;;  %v256_v44 = vadd.f32 %v347_v42, %v279_v16 }
  0xec   :  { %v215_v45 = vpop.f32.mrf.mxu0  ;;  %v247_v46 = vpop.f32.mrf.mxu1 }
  0xed   :  { %266 = vst [vmem:[%s506_s3 + $0x38] sm:$0xff] %v224_v43  ;;  %274 = vst [vmem:[%s506_s3 + $0x78] sm:$0xff] %v256_v44  ;;  %v216_v47 = vadd.f32 %v279_v16, %v215_v45  ;;  %v248_v48 = vadd.f32 %v279_v16, %v247_v46 }
  0xef   :  { %264 = vst [vmem:[%s506_s3 + $0x28] sm:$0xff] %v216_v47  ;;  %272 = vst [vmem:[%s506_s3 + $0x68] sm:$0xff] %v248_v48 }

// kernel: down_forward.4
= control target key start
LH: loop header
LB: loop body
LE: loop exit
PB: predicated region body
PF: predicated region fallthrough
CT: control target
= control target key end

     0   :  { %v486_v0 = vmov 0   ;;  %vm218_vm0 = vcmask 719872   ;;  %vm243_vm1 = vcmask 1043456   ;;  %s702_s1 = inlined_call_operand.vmem [shape: bf16[216,128], index: 1, kind: input, shape index: {}]   ;;  %s703_s0 = inlined_call_operand.vmem [shape: bf16[128,216], index: 0, kind: input, shape index: {}]   ;;  %s704_s2 = inlined_call_operand.vmem [shape: f32[1,128], index: 2, kind: input, shape index: {}]   ;;  %s705_s3 = inlined_call_operand.vmem [shape: f32[128,128], index: 3, kind: output, shape index: {}]  }
   0x1   :  { %247 = vmatprep.subr.bf16.mxu0 %v486_v0  ;;  %419 = vmatprep.subr.bf16.mxu1 %v486_v0  ;;  %v448_v1 = vld [vmem:[%s702_s1 + $0x38] sm:$0xff]   ;;  %v449_v2 = vld [vmem:[%s702_s1 + $0x30] sm:$0xff]   ;;  %v450_v3 = vld [vmem:[%s702_s1 + $0x28] sm:$0xff]  }
   0x2   :  { %248 = vmatpush1.bf16.msra.mxu0 %v448_v1  ;;  %433 = vmatpush1.bf16.msra.mxu1 %v448_v1  ;;  %v451_v4 = vld [vmem:[%s702_s1 + $0x20] sm:$0xff]   ;;  %v452_v5 = vld [vmem:[%s702_s1 + $0x18] sm:$0xff]   ;;  %v453_v8 = vld [vmem:[%s702_s1 + $0x10] sm:$0xff]  }
   0x3   :  { %249 = vmatprep.subr.bf16.mxu0 %v486_v0  ;;  %420 = vmatprep.subr.bf16.mxu1 %v486_v0  ;;  %v464_v6 = vld [vmem:[%s703_s0 + $0x4] ss:$8 sps:$4 sm:$0xff]   ;;  %v456_v11 = vld [vmem:[%s702_s1 + $0x68] ss:$0 sps:$4 sm:$0xff]   ;;  %v458_v14 = vld [vmem:[%s702_s1 + $0x58] sm:$0xff]  }
   0x4   :  { %411 = vmatprep.mubr.msk.bf16.mxu0 %vm218_vm0, %v464_v6  ;;  %v467_v7 = vld [vmem:[%s703_s0 + $0x44] ss:$8 sps:$4 sm:$0xff]   ;;  %v245_v12 = vsel %vm243_vm1, %v456_v11, 0  ;;  %v459_v15 = vld [vmem:[%s702_s1 + $0x50] sm:$0xff]   ;;  %v462_v18 = vld [vmem:[%s703_s0] ss:$8 sps:$4 sm:$0xff]  }
   0x5   :  { %415 = vmatprep.mubr.msk.bf16.mxu1 %vm218_vm0, %v467_v7  ;;  %v454_v9 = vld [vmem:[%s702_s1 + $0x8] sm:$0xff]   ;;  %v455_v10 = vld [vmem:[%s702_s1] sm:$0xff]   ;;  %v468_v20 = vld [vmem:[%s703_s0 + $0x14] ss:$8 sps:$4 sm:$0xff]  }
   0x6   :  { %250 = vmatpush1.bf16.msra.mxu0 %v449_v2  ;;  %434 = vmatpush1.bf16.msra.mxu1 %v449_v2  ;;  %v457_v13 = vld [vmem:[%s702_s1 + $0x60] sm:$0xff]   ;;  %v460_v16 = vld [vmem:[%s702_s1 + $0x48] sm:$0xff]   ;;  %v470_v21 = vld [vmem:[%s703_s0 + $0x54] ss:$8 sps:$4 sm:$0xff]  }
   0x7   :  { %251 = vmatprep.subr.bf16.mxu0 %v486_v0  ;;  %421 = vmatprep.subr.bf16.mxu1 %v486_v0  ;;  %v461_v17 = vld [vmem:[%s702_s1 + $0x40] sm:$0xff]   ;;  %v472_v22 = vld [vmem:[%s703_s0 + $0x10] ss:$8 sps:$4 sm:$0xff]   ;;  %v480_v28 = vld [vmem:[%s703_s0 + $0x34] ss:$8 sps:$4 sm:$0xff]  }
   0x8   :  { %v465_v19 = vld [vmem:[%s703_s0 + $0x40] ss:$8 sps:$4 sm:$0xff]   ;;  %v473_v23 = vld [vmem:[%s703_s0 + $0x50] ss:$8 sps:$4 sm:$0xff]   ;;  %v474_v24 = vld [vmem:[%s703_s0 + $0x24] ss:$8 sps:$4 sm:$0xff]  }
   0x9   :  { %v476_v25 = vld [vmem:[%s703_s0 + $0x64] ss:$8 sps:$4 sm:$0xff]   ;;  %v478_v26 = vld [vmem:[%s703_s0 + $0x20] ss:$8 sps:$4 sm:$0xff]   ;;  %v482_v29 = vld [vmem:[%s703_s0 + $0x74] ss:$8 sps:$4 sm:$0xff]  }
   0xa   :  { %252 = vmatpush1.bf16.msra.mxu0 %v450_v3  ;;  %435 = vmatpush1.bf16.msra.mxu1 %v450_v3  ;;  %v479_v27 = vld [vmem:[%s703_s0 + $0x60] ss:$8 sps:$4 sm:$0xff]   ;;  %v484_v30 = vld [vmem:[%s703_s0 + $0x30] ss:$8 sps:$4 sm:$0xff]  }
   0xb   :  { %253 = vmatprep.subr.bf16.mxu0 %v486_v0  ;;  %422 = vmatprep.subr.bf16.mxu1 %v486_v0  ;;  %v485_v31 = vld [vmem:[%s703_s0 + $0x70] ss:$8 sps:$4 sm:$0xff]   ;;  %v636_v32 = vld [vmem:[%s704_s2] ss:$0 sm:$0xff] }
   0xe   :  { %254 = vmatpush1.bf16.msra.mxu0 %v451_v4  ;;  %436 = vmatpush1.bf16.msra.mxu1 %v451_v4 }
   0xf   :  { %255 = vmatprep.subr.bf16.mxu0 %v486_v0  ;;  %423 = vmatprep.subr.bf16.mxu1 %v486_v0 }
  0x12   :  { %256 = vmatpush1.bf16.msra.mxu0 %v452_v5  ;;  %437 = vmatpush1.bf16.msra.mxu1 %v452_v5 }
  0x13   :  { %257 = vmatprep.subr.bf16.mxu0 %v486_v0  ;;  %424 = vmatprep.subr.bf16.mxu1 %v486_v0 }
  0x16   :  { %258 = vmatpush1.bf16.msra.mxu0 %v453_v8  ;;  %438 = vmatpush1.bf16.msra.mxu1 %v453_v8 }
  0x17   :  { %259 = vmatprep.subr.bf16.mxu0 %v486_v0  ;;  %425 = vmatprep.subr.bf16.mxu1 %v486_v0 }
  0x1a   :  { %260 = vmatpush1.bf16.msra.mxu0 %v454_v9  ;;  %439 = vmatpush1.bf16.msra.mxu1 %v454_v9 }
  0x1b   :  { %261 = vmatprep.subr.bf16.mxu0 %v486_v0  ;;  %426 = vmatprep.subr.bf16.mxu1 %v486_v0 }
  0x1e   :  { %262 = vmatpush1.bf16.msra.mxu0 %v455_v10  ;;  %440 = vmatpush1.bf16.msra.mxu1 %v455_v10 }
  0x1f   :  { %267 = vmatprep.subr.bf16.mxu0 %v486_v0  ;;  %427 = vmatprep.subr.bf16.mxu1 %v486_v0 }
  0x22   :  { %268 = vmatpush2.bf16.msra.mxu0 %v245_v12  ;;  %441 = vmatpush2.bf16.msra.mxu1 %v245_v12 }
  0x23   :  { %269 = vmatprep.subr.bf16.mxu0 %v486_v0  ;;  %428 = vmatprep.subr.bf16.mxu1 %v486_v0 }
  0x26   :  { %270 = vmatpush2.bf16.msra.mxu0 %v457_v13  ;;  %442 = vmatpush2.bf16.msra.mxu1 %v457_v13 }
  0x27   :  { %271 = vmatprep.subr.bf16.mxu0 %v486_v0  ;;  %429 = vmatprep.subr.bf16.mxu1 %v486_v0 }
  0x2a   :  { %272 = vmatpush2.bf16.msra.mxu0 %v458_v14  ;;  %443 = vmatpush2.bf16.msra.mxu1 %v458_v14 }
  0x2b   :  { %273 = vmatprep.subr.bf16.mxu0 %v486_v0  ;;  %430 = vmatprep.subr.bf16.mxu1 %v486_v0 }
  0x2e   :  { %274 = vmatpush2.bf16.msra.mxu0 %v459_v15  ;;  %444 = vmatpush2.bf16.msra.mxu1 %v459_v15 }
  0x2f   :  { %275 = vmatprep.subr.bf16.mxu0 %v486_v0  ;;  %431 = vmatprep.subr.bf16.mxu1 %v486_v0 }
  0x32   :  { %276 = vmatpush2.bf16.msra.mxu0 %v460_v16  ;;  %445 = vmatpush2.bf16.msra.mxu1 %v460_v16 }
  0x33   :  { %277 = vmatprep.subr.bf16.mxu0 %v486_v0  ;;  %432 = vmatprep.subr.bf16.mxu1 %v486_v0 }
  0x36   :  { %278 = vmatpush2.bf16.msra.mxu0 %v461_v17  ;;  %446 = vmatpush2.bf16.msra.mxu1 %v461_v17 }
  0x39   :  { %280 = vmatmul.mubr.bf16.vlgmr.msra.gmra.mxu0 %v462_v18  ;;  %312 = vmatmul.mubr.bf16.vlgmr.msra.gmra.mxu1 %v465_v19 }
  0x3a   :  { %412 = vmatprep.mubr.msk.bf16.mxu0 %vm218_vm0, %v468_v20  ;;  %416 = vmatprep.mubr.msk.bf16.mxu1 %vm218_vm0, %v470_v21 }
  0x41   :  { %288 = vmatmul.mubr.bf16.gmra.mxu0 %v472_v22  ;;  %320 = vmatmul.mubr.bf16.gmra.mxu1 %v473_v23 }
  0x42   :  { %413 = vmatprep.mubr.msk.bf16.mxu0 %vm218_vm0, %v474_v24  ;;  %417 = vmatprep.mubr.msk.bf16.mxu1 %vm218_vm0, %v476_v25 }
  0x49   :  { %296 = vmatmul.mubr.bf16.gmra.mxu0 %v478_v26  ;;  %328 = vmatmul.mubr.bf16.gmra.mxu1 %v479_v27 }
  0x4a   :  { %414 = vmatprep.mubr.msk.bf16.mxu0 %vm218_vm0, %v480_v28  ;;  %418 = vmatprep.mubr.msk.bf16.mxu1 %vm218_vm0, %v482_v29 }
  0x51   :  { %304 = vmatmul.mubr.bf16.gmra.mxu0 %v484_v30  ;;  %336 = vmatmul.mubr.bf16.gmra.mxu1 %v485_v31 }
  0xf9   :  { %v281_v33 = vpop.f32.mrf.mxu0  ;;  %v313_v34 = vpop.f32.mrf.mxu1 }
  0xfa   :  { %v282_v35 = vadd.f32 %v636_v32, %v281_v33  ;;  %v314_v36 = vadd.f32 %v636_v32, %v313_v34 }
  0xfb   :  { %v283_v37 = vpop.f32.mrf.mxu0  ;;  %v315_v38 = vpop.f32.mrf.mxu1 }
  0xfc   :  { %v344_v39 = vmax.f32 %v282_v35, 0.0  ;;  %v352_v40 = vmax.f32 %v314_v36, 0.0 }
  0xfd   :  { %v284_v41 = vpop.f32.mrf.mxu0  ;;  %v316_v42 = vpop.f32.mrf.mxu1 }
  0xfe   :  { %360 = vst [vmem:[%s705_s3] sm:$0xff] %v344_v39  ;;  %368 = vst [vmem:[%s705_s3 + $0x40] sm:$0xff] %v352_v40  ;;  %v285_v43 = vadd.f32 %v636_v32, %v284_v41  ;;  %v317_v44 = vadd.f32 %v636_v32, %v316_v42 }
  0xff   :  { %v286_v45 = vpop.f32.mrf.mxu0  ;;  %v318_v46 = vpop.f32.mrf.mxu1 }
 0x100   :  { %v345_v47 = vmax.f32 %v285_v43, 0.0  ;;  %v353_v48 = vmax.f32 %v317_v44, 0.0 }
 0x101   :  { %v289_v49 = vpop.f32.mrf.mxu0  ;;  %v321_v50 = vpop.f32.mrf.mxu1 }
 0x102   :  { %361 = vst [vmem:[%s705_s3 + $0x8] sm:$0xff] %v345_v47  ;;  %369 = vst [vmem:[%s705_s3 + $0x48] sm:$0xff] %v353_v48  ;;  %v290_v51 = vadd.f32 %v636_v32, %v289_v49  ;;  %v322_v52 = vadd.f32 %v636_v32, %v321_v50 }
 0x103   :  { %v291_v53 = vpop.f32.mrf.mxu0  ;;  %v323_v54 = vpop.f32.mrf.mxu1 }
 0x104   :  { %v346_v55 = vmax.f32 %v290_v51, 0.0  ;;  %v354_v56 = vmax.f32 %v322_v52, 0.0 }
 0x105   :  { %v292_v57 = vpop.f32.mrf.mxu0  ;;  %v324_v58 = vpop.f32.mrf.mxu1 }
 0x106   :  { %362 = vst [vmem:[%s705_s3 + $0x10] sm:$0xff] %v346_v55  ;;  %370 = vst [vmem:[%s705_s3 + $0x50] sm:$0xff] %v354_v56  ;;  %v293_v59 = vadd.f32 %v636_v32, %v292_v57  ;;  %v325_v60 = vadd.f32 %v636_v32, %v324_v58 }
 0x107   :  { %v294_v61 = vpop.f32.mrf.mxu0  ;;  %v326_v62 = vpop.f32.mrf.mxu1 }
 0x108   :  { %v347_v63 = vmax.f32 %v293_v59, 0.0  ;;  %v355_v0 = vmax.f32 %v325_v60, 0.0 }
 0x109   :  { %v297_v1 = vpop.f32.mrf.mxu0  ;;  %v329_v2 = vpop.f32.mrf.mxu1 }
 0x10a   :  { %363 = vst [vmem:[%s705_s3 + $0x18] sm:$0xff] %v347_v63  ;;  %371 = vst [vmem:[%s705_s3 + $0x58] sm:$0xff] %v355_v0  ;;  %v298_v3 = vadd.f32 %v636_v32, %v297_v1  ;;  %v330_v4 = vadd.f32 %v636_v32, %v329_v2 }
 0x10b   :  { %v299_v5 = vpop.f32.mrf.mxu0  ;;  %v331_v6 = vpop.f32.mrf.mxu1 }
 0x10c   :  { %v348_v7 = vmax.f32 %v298_v3, 0.0  ;;  %v356_v8 = vmax.f32 %v330_v4, 0.0 }
 0x10d   :  { %v300_v9 = vpop.f32.mrf.mxu0  ;;  %v332_v10 = vpop.f32.mrf.mxu1 }
 0x10e   :  { %364 = vst [vmem:[%s705_s3 + $0x20] sm:$0xff] %v348_v7  ;;  %372 = vst [vmem:[%s705_s3 + $0x60] sm:$0xff] %v356_v8  ;;  %v301_v11 = vadd.f32 %v636_v32, %v300_v9  ;;  %v333_v12 = vadd.f32 %v636_v32, %v332_v10 }
 0x10f   :  { %v302_v13 = vpop.f32.mrf.mxu0  ;;  %v334_v14 = vpop.f32.mrf.mxu1 }
 0x110   :  { %v349_v15 = vmax.f32 %v301_v11, 0.0  ;;  %v357_v16 = vmax.f32 %v333_v12, 0.0 }
 0x111   :  { %v305_v17 = vpop.f32.mrf.mxu0  ;;  %v337_v18 = vpop.f32.mrf.mxu1 }
 0x112   :  { %365 = vst [vmem:[%s705_s3 + $0x28] sm:$0xff] %v349_v15  ;;  %373 = vst [vmem:[%s705_s3 + $0x68] sm:$0xff] %v357_v16  ;;  %v306_v19 = vadd.f32 %v636_v32, %v305_v17  ;;  %v338_v20 = vadd.f32 %v636_v32, %v337_v18 }
 0x113   :  { %v307_v21 = vpop.f32.mrf.mxu0  ;;  %v339_v22 = vpop.f32.mrf.mxu1 }
 0x114   :  { %v350_v23 = vmax.f32 %v306_v19, 0.0  ;;  %v358_v24 = vmax.f32 %v338_v20, 0.0 }
 0x115   :  { %v308_v25 = vpop.f32.mrf.mxu0  ;;  %v340_v26 = vpop.f32.mrf.mxu1 }
 0x116   :  { %366 = vst [vmem:[%s705_s3 + $0x30] sm:$0xff] %v350_v23  ;;  %374 = vst [vmem:[%s705_s3 + $0x70] sm:$0xff] %v358_v24  ;;  %v309_v27 = vadd.f32 %v636_v32, %v308_v25  ;;  %v341_v28 = vadd.f32 %v636_v32, %v340_v26 }
 0x117   :  { %v310_v29 = vpop.f32.mrf.mxu0  ;;  %v342_v30 = vpop.f32.mrf.mxu1 }
 0x118   :  { %v351_v31 = vmax.f32 %v309_v27, 0.0  ;;  %v359_v33 = vmax.f32 %v341_v28, 0.0 }
 0x11a   :  { %367 = vst [vmem:[%s705_s3 + $0x38] sm:$0xff] %v351_v31  ;;  %375 = vst [vmem:[%s705_s3 + $0x78] sm:$0xff] %v359_v33 }

// kernel: down_forward.5
= control target key start
LH: loop header
LB: loop body
LE: loop exit
PB: predicated region body
PF: predicated region fallthrough
CT: control target
= control target key end

     0   :  { %v524_v1 = vmov 0   ;;  %vm219_vm0 = vcmask 719872   ;;  %s698_s0 = inlined_call_operand.vmem [shape: bf16[128,216], index: 0, kind: input, shape index: {}]   ;;  %s699_s1 = inlined_call_operand.vmem [shape: bf16[216,128], index: 1, kind: input, shape index: {}]   ;;  %s700_s2 = inlined_call_operand.vmem [shape: f32[1,128], index: 2, kind: input, shape index: {}]   ;;  %s701_s3 = inlined_call_operand.hbm [shape: f32[128,128], index: 3, kind: output, shape index: {}]  }
   0x1   :  { %v464_v0 = vld [vmem:[%s699_s1 + $0x38] sm:$0xff]   ;;  %248 = vmatprep.subr.bf16.mxu0 %v524_v1  ;;  %432 = vmatprep.subr.bf16.mxu1 %v524_v1  ;;  %v465_v2 = vld [vmem:[%s699_s1 + $0x30] sm:$0xff]   ;;  %v466_v3 = vld [vmem:[%s699_s1 + $0x28] sm:$0xff]  }
   0x2   :  { %249 = vmatpush1.bf16.msra.mxu0 %v464_v0  ;;  %446 = vmatpush1.bf16.msra.mxu1 %v464_v0  ;;  %v467_v4 = vld [vmem:[%s699_s1 + $0x20] sm:$0xff]   ;;  %v468_v5 = vld [vmem:[%s699_s1 + $0x18] sm:$0xff]   ;;  %v469_v8 = vld [vmem:[%s699_s1 + $0x10] sm:$0xff]  }
   0x3   :  { %250 = vmatprep.subr.bf16.mxu0 %v524_v1  ;;  %433 = vmatprep.subr.bf16.mxu1 %v524_v1  ;;  %v480_v6 = vld [vmem:[%s698_s0 + $0x4] ss:$8 sps:$4 sm:$0xff]  }
   0x4   :  { %424 = vmatprep.mubr.msk.bf16.mxu0 %vm219_vm0, %v480_v6  ;;  %v483_v7 = vld [vmem:[%s698_s0 + $0x44] ss:$8 sps:$4 sm:$0xff]  }
   0x5   :  { %428 = vmatprep.mubr.msk.bf16.mxu1 %vm219_vm0, %v483_v7  ;;  %v470_v9 = vld [vmem:[%s699_s1 + $0x8] sm:$0xff]  }
   0x6   :  { %251 = vmatpush1.bf16.msra.mxu0 %v465_v2  ;;  %447 = vmatpush1.bf16.msra.mxu1 %v465_v2 }
   0x7   :  { %252 = vmatprep.subr.bf16.mxu0 %v524_v1  ;;  %434 = vmatprep.subr.bf16.mxu1 %v524_v1 }
   0xa   :  { %253 = vmatpush1.bf16.msra.mxu0 %v466_v3  ;;  %448 = vmatpush1.bf16.msra.mxu1 %v466_v3 }
   0xb   :  { %254 = vmatprep.subr.bf16.mxu0 %v524_v1  ;;  %435 = vmatprep.subr.bf16.mxu1 %v524_v1 }
   0xe   :  { %255 = vmatpush1.bf16.msra.mxu0 %v467_v4  ;;  %449 = vmatpush1.bf16.msra.mxu1 %v467_v4 }
   0xf   :  { %256 = vmatprep.subr.bf16.mxu0 %v524_v1  ;;  %436 = vmatprep.subr.bf16.mxu1 %v524_v1 }
  0x12   :  { %257 = vmatpush1.bf16.msra.mxu0 %v468_v5  ;;  %450 = vmatpush1.bf16.msra.mxu1 %v468_v5 }
  0x13   :  { %258 = vmatprep.subr.bf16.mxu0 %v524_v1  ;;  %437 = vmatprep.subr.bf16.mxu1 %v524_v1 }
  0x16   :  { %259 = vmatpush1.bf16.msra.mxu0 %v469_v8  ;;  %451 = vmatpush1.bf16.msra.mxu1 %v469_v8 }
  0x17   :  { %260 = vmatprep.subr.bf16.mxu0 %v524_v1  ;;  %438 = vmatprep.subr.bf16.mxu1 %v524_v1 }
  0x18   :  { %8 = vsyncpa [#allocation3], 0  ;;  %v471_v10 = vld [vmem:[%s699_s1] sm:$0xff]   ;;  %v472_v11 = vld [vmem:[%s699_s1 + $0x68] ss:$0 sps:$4 sm:$0xff]   ;;  %vm244_vm1 = vcmask 1043456  }
  0x19   :  { %v246_v12 = vsel %vm244_vm1, %v472_v11, 0  ;;  %v473_v13 = vld [vmem:[%s699_s1 + $0x60] sm:$0xff]   ;;  %v474_v14 = vld [vmem:[%s699_s1 + $0x58] sm:$0xff]   ;;  %v475_v15 = vld [vmem:[%s699_s1 + $0x50] sm:$0xff]  }
  0x1a   :  { %261 = vmatpush1.bf16.msra.mxu0 %v470_v9  ;;  %452 = vmatpush1.bf16.msra.mxu1 %v470_v9  ;;  %v476_v16 = vld [vmem:[%s699_s1 + $0x48] sm:$0xff]   ;;  %v477_v17 = vld [vmem:[%s699_s1 + $0x40] sm:$0xff]   ;;  %v484_v20 = vld [vmem:[%s698_s0 + $0x14] ss:$8 sps:$4 sm:$0xff]  }
  0x1b   :  { %262 = vmatprep.subr.bf16.mxu0 %v524_v1  ;;  %439 = vmatprep.subr.bf16.mxu1 %v524_v1  ;;  %v478_v18 = vld [vmem:[%s698_s0] ss:$8 sps:$4 sm:$0xff]   ;;  %v486_v21 = vld [vmem:[%s698_s0 + $0x54] ss:$8 sps:$4 sm:$0xff]   ;;  %v488_v22 = vld [vmem:[%s698_s0 + $0x10] ss:$8 sps:$4 sm:$0xff]  }
  0x1c   :  { %v481_v19 = vld [vmem:[%s698_s0 + $0x40] ss:$8 sps:$4 sm:$0xff]   ;;  %v489_v23 = vld [vmem:[%s698_s0 + $0x50] ss:$8 sps:$4 sm:$0xff]   ;;  %v490_v24 = vld [vmem:[%s698_s0 + $0x24] ss:$8 sps:$4 sm:$0xff]  }
  0x1d   :  { %v492_v25 = vld [vmem:[%s698_s0 + $0x64] ss:$8 sps:$4 sm:$0xff]   ;;  %v494_v26 = vld [vmem:[%s698_s0 + $0x20] ss:$8 sps:$4 sm:$0xff]   ;;  %v496_v28 = vld [vmem:[%s698_s0 + $0x34] ss:$8 sps:$4 sm:$0xff]  }
  0x1e   :  { %263 = vmatpush1.bf16.msra.mxu0 %v471_v10  ;;  %453 = vmatpush1.bf16.msra.mxu1 %v471_v10  ;;  %v495_v27 = vld [vmem:[%s698_s0 + $0x60] ss:$8 sps:$4 sm:$0xff]   ;;  %v498_v29 = vld [vmem:[%s698_s0 + $0x74] ss:$8 sps:$4 sm:$0xff]   ;;  %v500_v30 = vld [vmem:[%s698_s0 + $0x30] ss:$8 sps:$4 sm:$0xff]  }
  0x1f   :  { %268 = vmatprep.subr.bf16.mxu0 %v524_v1  ;;  %440 = vmatprep.subr.bf16.mxu1 %v524_v1  ;;  %v501_v31 = vld [vmem:[%s698_s0 + $0x70] ss:$8 sps:$4 sm:$0xff]   ;;  %v677_v32 = vld [vmem:[%s700_s2] ss:$0 sm:$0xff]  ;;  %s525_s0 = smov [#allocation2]  }
  0x20   :  { %s382_s2 = sshll.u32 %s525_s0, 4  ;;  %s383_s2 = int_to_ptr.vmem [resolvable:$true] %s382_s2 }
  0x21   :  { %s502_s19 = scalar_lea.vmem %s383_s2, 2048  ;;  %p507_p1 = scmp.lt.s32.totalorder %s383_s2, %s383_s2 }
  0x22   :  { %269 = vmatpush2.bf16.msra.mxu0 %v246_v12  ;;  %454 = vmatpush2.bf16.msra.mxu1 %v246_v12  ;;  %p503_p0 = scmp.ne.s32.totalorder %s383_s2, %s502_s19  ;;  %p508_p2 = scmp.lt.s32.totalorder %s502_s19, %s502_s19 }
  0x23   :  { %270 = vmatprep.subr.bf16.mxu0 %v524_v1  ;;  %441 = vmatprep.subr.bf16.mxu1 %v524_v1 }
  0x24   :  { %p509_p3 = por %p508_p2, %p507_p1 }
  0x26   :  { %271 = vmatpush2.bf16.msra.mxu0 %v473_v13  ;;  %455 = vmatpush2.bf16.msra.mxu1 %v473_v13  ;;  %p510_p4 = pnand %p509_p3, %p503_p0 }
  0x27   :  { %272 = vmatprep.subr.bf16.mxu0 %v524_v1  ;;  %442 = vmatprep.subr.bf16.mxu1 %v524_v1 }
  0x2a   :  { %273 = vmatpush2.bf16.msra.mxu0 %v474_v14  ;;  %456 = vmatpush2.bf16.msra.mxu1 %v474_v14 }
  0x2b   :  { %274 = vmatprep.subr.bf16.mxu0 %v524_v1  ;;  %443 = vmatprep.subr.bf16.mxu1 %v524_v1 }
  0x2e   :  { %275 = vmatpush2.bf16.msra.mxu0 %v475_v15  ;;  %457 = vmatpush2.bf16.msra.mxu1 %v475_v15 }
  0x2f   :  { %276 = vmatprep.subr.bf16.mxu0 %v524_v1  ;;  %444 = vmatprep.subr.bf16.mxu1 %v524_v1 }
  0x32   :  { %277 = vmatpush2.bf16.msra.mxu0 %v476_v16  ;;  %458 = vmatpush2.bf16.msra.mxu1 %v476_v16 }
  0x33   :  { %278 = vmatprep.subr.bf16.mxu0 %v524_v1  ;;  %445 = vmatprep.subr.bf16.mxu1 %v524_v1 }
  0x36   :  { %279 = vmatpush2.bf16.msra.mxu0 %v477_v17  ;;  %459 = vmatpush2.bf16.msra.mxu1 %v477_v17 }
  0x39   :  { %281 = vmatmul.mubr.bf16.vlgmr.msra.gmra.mxu0 %v478_v18  ;;  %313 = vmatmul.mubr.bf16.vlgmr.msra.gmra.mxu1 %v481_v19 }
  0x3a   :  { %425 = vmatprep.mubr.msk.bf16.mxu0 %vm219_vm0, %v484_v20  ;;  %429 = vmatprep.mubr.msk.bf16.mxu1 %vm219_vm0, %v486_v21 }
  0x41   :  { %289 = vmatmul.mubr.bf16.gmra.mxu0 %v488_v22  ;;  %321 = vmatmul.mubr.bf16.gmra.mxu1 %v489_v23 }
  0x42   :  { %426 = vmatprep.mubr.msk.bf16.mxu0 %vm219_vm0, %v490_v24  ;;  %430 = vmatprep.mubr.msk.bf16.mxu1 %vm219_vm0, %v492_v25 }
  0x49   :  { %297 = vmatmul.mubr.bf16.gmra.mxu0 %v494_v26  ;;  %329 = vmatmul.mubr.bf16.gmra.mxu1 %v495_v27 }
  0x4a   :  { %427 = vmatprep.mubr.msk.bf16.mxu0 %vm219_vm0, %v496_v28  ;;  %431 = vmatprep.mubr.msk.bf16.mxu1 %vm219_vm0, %v498_v29 }
  0x51   :  { %305 = vmatmul.mubr.bf16.gmra.mxu0 %v500_v30  ;;  %337 = vmatmul.mubr.bf16.gmra.mxu1 %v501_v31 }
  0xf9   :  { %v282_v33 = vpop.f32.mrf.mxu0  ;;  %v314_v34 = vpop.f32.mrf.mxu1 }
  0xfa   :  { %v283_v35 = vadd.f32 %v677_v32, %v282_v33  ;;  %v315_v36 = vadd.f32 %v677_v32, %v314_v34 }
  0xfb   :  { %v284_v37 = vpop.f32.mrf.mxu0  ;;  %v316_v38 = vpop.f32.mrf.mxu1 }
  0xfc   :  { %v345_v39 = vmax.f32 %v283_v35, 0.0  ;;  %v353_v40 = vmax.f32 %v315_v36, 0.0 }
  0xfd   :  { %v285_v41 = vpop.f32.mrf.mxu0  ;;  %v317_v42 = vpop.f32.mrf.mxu1 }
  0xfe   :  { %361 = vst [vmem:[#allocation2] sm:$0xff] %v345_v39  ;;  %369 = vst [vmem:[#allocation2 + $0x40] sm:$0xff] %v353_v40  ;;  %v286_v43 = vadd.f32 %v677_v32, %v285_v41  ;;  %v318_v44 = vadd.f32 %v677_v32, %v317_v42 }
  0xff   :  { %v287_v45 = vpop.f32.mrf.mxu0  ;;  %v319_v46 = vpop.f32.mrf.mxu1 }
 0x100   :  { %v346_v47 = vmax.f32 %v286_v43, 0.0  ;;  %v354_v48 = vmax.f32 %v318_v44, 0.0 }
 0x101   :  { %v290_v49 = vpop.f32.mrf.mxu0  ;;  %v322_v50 = vpop.f32.mrf.mxu1 }
 0x102   :  { %362 = vst [vmem:[#allocation2 + $0x8] sm:$0xff] %v346_v47  ;;  %370 = vst [vmem:[#allocation2 + $0x48] sm:$0xff] %v354_v48  ;;  %v291_v51 = vadd.f32 %v677_v32, %v290_v49  ;;  %v323_v52 = vadd.f32 %v677_v32, %v322_v50 }
 0x103   :  { %v292_v53 = vpop.f32.mrf.mxu0  ;;  %v324_v54 = vpop.f32.mrf.mxu1 }
 0x104   :  { %v347_v55 = vmax.f32 %v291_v51, 0.0  ;;  %v355_v56 = vmax.f32 %v323_v52, 0.0 }
 0x105   :  { %v293_v57 = vpop.f32.mrf.mxu0  ;;  %v325_v58 = vpop.f32.mrf.mxu1 }
 0x106   :  { %363 = vst [vmem:[#allocation2 + $0x10] sm:$0xff] %v347_v55  ;;  %371 = vst [vmem:[#allocation2 + $0x50] sm:$0xff] %v355_v56  ;;  %v294_v59 = vadd.f32 %v677_v32, %v293_v57  ;;  %v326_v60 = vadd.f32 %v677_v32, %v325_v58 }
 0x107   :  { %v295_v61 = vpop.f32.mrf.mxu0  ;;  %v327_v62 = vpop.f32.mrf.mxu1 }
 0x108   :  { %v348_v63 = vmax.f32 %v294_v59, 0.0  ;;  %v356_v0 = vmax.f32 %v326_v60, 0.0 }
 0x109   :  { %v298_v1 = vpop.f32.mrf.mxu0  ;;  %v330_v2 = vpop.f32.mrf.mxu1 }
 0x10a   :  { %364 = vst [vmem:[#allocation2 + $0x18] sm:$0xff] %v348_v63  ;;  %372 = vst [vmem:[#allocation2 + $0x58] sm:$0xff] %v356_v0  ;;  %v299_v3 = vadd.f32 %v677_v32, %v298_v1  ;;  %v331_v4 = vadd.f32 %v677_v32, %v330_v2 }
 0x10b   :  { %v300_v5 = vpop.f32.mrf.mxu0  ;;  %v332_v6 = vpop.f32.mrf.mxu1 }
 0x10c   :  { %v349_v7 = vmax.f32 %v299_v3, 0.0  ;;  %v357_v8 = vmax.f32 %v331_v4, 0.0 }
 0x10d   :  { %v301_v9 = vpop.f32.mrf.mxu0  ;;  %v333_v10 = vpop.f32.mrf.mxu1 }
 0x10e   :  { %365 = vst [vmem:[#allocation2 + $0x20] sm:$0xff] %v349_v7  ;;  %373 = vst [vmem:[#allocation2 + $0x60] sm:$0xff] %v357_v8  ;;  %v302_v11 = vadd.f32 %v677_v32, %v301_v9  ;;  %v334_v12 = vadd.f32 %v677_v32, %v333_v10 }
 0x10f   :  { %v303_v13 = vpop.f32.mrf.mxu0  ;;  %v335_v14 = vpop.f32.mrf.mxu1 }
 0x110   :  { %v350_v15 = vmax.f32 %v302_v11, 0.0  ;;  %v358_v16 = vmax.f32 %v334_v12, 0.0 }
 0x111   :  { %v306_v17 = vpop.f32.mrf.mxu0  ;;  %v338_v18 = vpop.f32.mrf.mxu1 }
 0x112   :  { %366 = vst [vmem:[#allocation2 + $0x28] sm:$0xff] %v350_v15  ;;  %374 = vst [vmem:[#allocation2 + $0x68] sm:$0xff] %v358_v16  ;;  %v307_v19 = vadd.f32 %v677_v32, %v306_v17  ;;  %v339_v20 = vadd.f32 %v677_v32, %v338_v18 }
 0x113   :  { %v308_v21 = vpop.f32.mrf.mxu0  ;;  %v340_v22 = vpop.f32.mrf.mxu1 }
 0x114   :  { %v351_v23 = vmax.f32 %v307_v19, 0.0  ;;  %v359_v24 = vmax.f32 %v339_v20, 0.0 }
 0x115   :  { %v309_v25 = vpop.f32.mrf.mxu0  ;;  %v341_v26 = vpop.f32.mrf.mxu1 }
 0x116   :  { %367 = vst [vmem:[#allocation2 + $0x30] sm:$0xff] %v351_v23  ;;  %375 = vst [vmem:[#allocation2 + $0x70] sm:$0xff] %v359_v24  ;;  %v310_v27 = vadd.f32 %v677_v32, %v309_v25  ;;  %v342_v28 = vadd.f32 %v677_v32, %v341_v26 }
 0x117   :  { %v311_v29 = vpop.f32.mrf.mxu0  ;;  %v343_v30 = vpop.f32.mrf.mxu1 }
 0x118   :  { %v352_v31 = vmax.f32 %v310_v27, 0.0  ;;  %v360_v33 = vmax.f32 %v342_v28, 0.0 }
 0x11a   :  { %368 = vst [vmem:[#allocation2 + $0x38] sm:$0xff] %v352_v31  ;;  %376 = vst [vmem:[#allocation2 + $0x78] sm:$0xff] %v360_v33 }
 0x11b   :  { %513 = shalt.err (!%p510_p4)
}
 0x11c   :  { %s526_s20 = smov 128   ;;  %s527_s21 = smov 8  }
 0x11d   :  { %388 = dma.vmem_to_hbm [thread:$0]  %s383_s2, 2048, %s701_s3, [#allocation3], %s526_s20, %s526_s20, %s527_s21  }
 0x11e   :  { %522 = dma.done.wait [#allocation3], 2048  }
 0x11f   :  { %523 = vsyncadd [#allocation3], 4294965248 }
 0x120   :  { %392 = vsyncpa [#allocation3], 1 }

</bundles_post_ra>
